<compile_context>
chip_gen: v7x
topology: tpu7x:2x2x1
jax: 0.10.0
libtpu: 0.0.40
codegen_flags: <defaults>
</compile_context>

<pallas_src>
import jax
import jax.numpy as jnp
from jax.experimental import pallas as pl
from jax.experimental.pallas import tpu as pltpu


def _round_up(x, m):
    return (x + m - 1) // m * m


def _cdiv(a, b):
    return (a + b - 1) // b


def _k_tiling(d_in):
    """Reduction tile (tk) over D_in and the padded D_in."""
    if d_in <= 512:
        tk = _round_up(d_in, 128)
        return tk, tk
    tk = 512                       # keeps W1 tile ~= tk*total_pad*2B per buffer
    return tk, _round_up(d_in, tk)


def _m_tiling(batch):
    """Batch tile (tm) and padded batch."""
    bp16 = _round_up(batch, 16)    # bf16 vreg packs (16, 128): avoid sublane relayout
    tm = min(512, bp16)            # >=256 keeps the 256-wide MXU full; 512 amortizes
                                   # the ~0.35us per-grid-step overhead at large B
    # v7x megacore: keep >=2 steps on the parallel batch axis when the batch can split.
    if bp16 > 256 and _cdiv(bp16, tm) < 2:
        tm = _round_up(_cdiv(bp16, 2), 16)
    return tm, _round_up(batch, tm)


def _make_kernel(with_cat):
    """Fused ensemble forward: streamed K-tiled matmul #1, resident matmul #2."""

    def kernel(x_ref, w1_ref, b1_ref, w2_ref, b2_ref, *refs):
        if with_cat:
            out_ref, cat_ref, acc_ref = refs
        else:
            out_ref, acc_ref = refs

        k = pl.program_id(1)

        @pl.when(k == 0)
        def _init():
            acc_ref[...] = jnp.zeros_like(acc_ref)

        # Partial product of the fused backbone Linear along the D_in axis (MXU, f32 acc).
        acc_ref[...] += jnp.dot(x_ref[...], w1_ref[...],
                                preferred_element_type=jnp.float32)

        @pl.when(k == pl.num_programs(1) - 1)
        def _finalize():
            cat = jnp.maximum(acc_ref[...] + b1_ref[...], 0.0)   # f32 bias + ReLU (VPU)
            cat_bf = cat.astype(w2_ref.dtype)                    # bf16 for MXU / HBM store
            if with_cat:
                cat_ref[...] = cat_bf.astype(cat_ref.dtype)
            # Heads + fuse + 1/(K+1) average pre-folded into W2/b2: one matmul.
            outs = jnp.dot(cat_bf, w2_ref[...],
                           preferred_element_type=jnp.float32) + b2_ref[...]
            out_ref[...] = outs.astype(out_ref.dtype)

    return kernel


def prepare_fused_params(params, num_classes, compute_dtype=jnp.bfloat16):
    """Host-side (once per model) algebraic fusion + padding of all ensemble weights."""
    classifier_params, (w_fuse, b_fuse) = params
    K = len(classifier_params)
    scale = 1.0 / float(K + 1)

    # Backbones: concat along the output-feature axis -> one big Linear.
    w1 = jnp.concatenate([wf for (wf, _, _, _) in classifier_params], axis=1)
    b1 = jnp.concatenate([bf for (_, bf, _, _) in classifier_params], axis=1)

    # Heads + fuse: sum_k f_k @ w_head_k == cat @ vstack(w_head_k); fold the
    # (K+1)-average in as well.
    w_heads = jnp.concatenate([wh for (_, _, wh, _) in classifier_params], axis=0)
    b_heads = sum(bh for (_, _, _, bh) in classifier_params)
    w2 = (w_heads + w_fuse) * scale                        # (total_dim, 2C)
    b2 = (b_heads + b_fuse) * scale                        # (1, 2C)

    d_in, total_dim = w1.shape
    out_cols = 2 * num_classes

    # Zero padding is an exact no-op through relu(0@W+0)=0 and zero W2 rows/cols:
    #   total_dim -> x256 (MXU-native N of matmul #1 / K of matmul #2)
    #   out cols  -> x128 (lane-dense unmasked stores)
    #   D_in      -> multiple of the reduction tile tk
    total_pad = _round_up(total_dim, 256)
    out_pad = _round_up(out_cols, 128)
    tk, d_in_pad = _k_tiling(d_in)

    w1 = jnp.pad(w1, ((0, d_in_pad - d_in), (0, total_pad - total_dim)))
    b1 = jnp.pad(b1, ((0, 0), (0, total_pad - total_dim)))
    w2 = jnp.pad(w2, ((0, total_pad - total_dim), (0, out_pad - out_cols)))
    b2 = jnp.pad(b2, ((0, 0), (0, out_pad - out_cols)))

    return dict(
        w1=w1.astype(compute_dtype), b1=b1.astype(jnp.float32),
        w2=w2.astype(compute_dtype), b2=b2.astype(jnp.float32),
        d_in=d_in, d_in_pad=d_in_pad, tk=tk,
        total_dim=total_dim, total_pad=total_pad,
        out_cols=out_cols, out_pad=out_pad,
        compute_dtype=compute_dtype,
    )


def ensemble_forward(x_nchw, fused, num_classes, return_cat=True):
    """Ensemble forward; returns (list of (B,2) per-class logits, cat_feats or None)."""
    w1, b1, w2, b2 = fused["w1"], fused["b1"], fused["w2"], fused["b2"]
    d_in, d_in_pad, tk = fused["d_in"], fused["d_in_pad"], fused["tk"]
    total_dim, total_pad = fused["total_dim"], fused["total_pad"]
    out_cols, out_pad = fused["out_cols"], fused["out_pad"]
    cdt = fused["compute_dtype"]

    B = x_nchw.shape[0]
    x_flat = x_nchw.reshape(B, -1)
    assert x_flat.shape[1] == d_in, "input feature dim mismatch"

    tm, b_padded = _m_tiling(B)
    x_flat = jnp.pad(x_flat, ((0, b_padded - B), (0, d_in_pad - d_in))).astype(cdt)

    num_m = b_padded // tm
    num_k = d_in_pad // tk
    grid = (num_m, num_k)          # reduction axis last, marked "arbitrary"

    kernel = _make_kernel(return_cat)

    out_shapes = [jax.ShapeDtypeStruct((b_padded, out_pad), cdt)]
    out_specs = [pl.BlockSpec((tm, out_pad), lambda i, k: (i, 0))]
    if return_cat:
        out_shapes.append(jax.ShapeDtypeStruct((b_padded, total_pad), cdt))
        out_specs.append(pl.BlockSpec((tm, total_pad), lambda i, k: (i, 0)))

    # VMEM budget: double-buffered streamed blocks (x, W1, outputs), single-buffered
    # grid-invariant weights (b1, W2, b2), plus the f32 accumulator scratch.
    vmem_est = (2 * tm * tk * 2 + 2 * tk * total_pad * 2
                + total_pad * 4 + total_pad * out_pad * 2 + out_pad * 4
                + 2 * tm * out_pad * 2
                + (2 * tm * total_pad * 2 if return_cat else 0)
                + tm * total_pad * 4)
    vmem_limit = int(min(100 << 20, max(32 << 20, 2 * vmem_est)))

    flops = 2 * b_padded * (d_in_pad * total_pad + total_pad * out_pad)
    bytes_accessed = (b_padded * d_in_pad * 2
                      + num_m * (d_in_pad * total_pad * 2 + total_pad * 4
                                 + total_pad * out_pad * 2 + out_pad * 4)
                      + b_padded * out_pad * 2
                      + (b_padded * total_pad * 2 if return_cat else 0))

    results = pl.pallas_call(
        kernel,
        out_shape=tuple(out_shapes),
        grid_spec=pltpu.PrefetchScalarGridSpec(
            num_scalar_prefetch=0,
            grid=grid,
            in_specs=[
                # streamed over the batch / reduction axes -> default double buffering
                pl.BlockSpec((tm, tk), lambda i, k: (i, k)),             # x tile
                pl.BlockSpec((tk, total_pad), lambda i, k: (k, 0)),      # W1 tile
                # grid-invariant operands -> single buffer (halves their VMEM)
                pl.BlockSpec((1, total_pad), lambda i, k: (0, 0),
                             pipeline_mode=pl.Buffered(1)),              # b1
                pl.BlockSpec((total_pad, out_pad), lambda i, k: (0, 0),
                             pipeline_mode=pl.Buffered(1)),              # W2
                pl.BlockSpec((1, out_pad), lambda i, k: (0, 0),
                             pipeline_mode=pl.Buffered(1)),              # b2
            ],
            out_specs=tuple(out_specs),
            scratch_shapes=[pltpu.VMEM((tm, total_pad), jnp.float32)],   # cat accumulator
        ),
        compiler_params=pltpu.CompilerParams(
            dimension_semantics=("parallel", "arbitrary"),
            vmem_limit_bytes=vmem_limit),
        cost_estimate=pl.CostEstimate(
            flops=flops, transcendentals=0, bytes_accessed=bytes_accessed),
    )(x_flat, w1, b1, w2, b2)

    if return_cat:
        outs_pad, cat_pad = results
        cat_feats = cat_pad[:B, :total_dim]            # bf16 features
    else:
        (outs_pad,) = results
        cat_feats = None

    # Single slice + reshape instead of num_classes tiny column slices.
    out3 = outs_pad[:B, :out_cols].astype(jnp.float32).reshape(B, num_classes, 2)
    outs = [out3[:, j] for j in range(num_classes)]
    # TODO(synk): training-mode `auxiliary` branch returns F.normalize(cat_feats);
    # only the eval path (outs, cat_feats) is implemented.
    return outs, cat_feats


def reference_forward(x_nchw, params, num_classes):
    """Plain-JAX f32 reference matching the PyTorch forward semantics."""
    classifier_params, (w_fuse, b_fuse) = params
    B = x_nchw.shape[0]
    xf = x_nchw.reshape(B, -1).astype(jnp.float32)

    feats_list = []
    head_sum = 0.0
    for (wf, bf, wh, bh) in classifier_params:
        f = jnp.maximum(xf @ wf + bf, 0.0)
        feats_list.append(f)
        head_sum = head_sum + (f @ wh + bh)
    cat = jnp.concatenate(feats_list, axis=1)
    fuse = cat @ w_fuse + b_fuse
    outs_all = (head_sum + fuse) / float(len(classifier_params) + 1)
    outs = [outs_all[:, 2 * j: 2 * j + 2] for j in range(num_classes)]
    return outs, cat


def init_params(key, in_dim, feat_dims, num_classes):
    """Deterministic synthetic parameter initialization."""
    classifier_params = []
    for fd in feat_dims:
        key, k1, k2, k3, k4 = jax.random.split(key, 5)
        w_feat = jax.random.normal(k1, (in_dim, fd), jnp.float32) * 0.02
        b_feat = jax.random.normal(k2, (1, fd), jnp.float32) * 0.02
        w_head = jax.random.normal(k3, (fd, 2 * num_classes), jnp.float32) * 0.1
        b_head = jax.random.normal(k4, (1, 2 * num_classes), jnp.float32) * 0.1
        classifier_params.append((w_feat, b_feat, w_head, b_head))
    key, k1, k2 = jax.random.split(key, 3)
    total_dim = sum(feat_dims)
    w_fuse = jax.random.normal(k1, (total_dim, 2 * num_classes), jnp.float32) * 0.1
    b_fuse = jax.random.normal(k2, (1, 2 * num_classes), jnp.float32) * 0.1
    return classifier_params, (w_fuse, b_fuse)


if __name__ == "__main__":
    # Small shapes consistent with the module: batch=2, C=4, 16x16 images,
    # 2 ensemble members with feature dims (128, 256), num_classes=3.
    # D_in = 1024 -> tk=512 -> two reduction steps (exercises the accumulator path).
    B, C, H, W = 2, 4, 16, 16
    num_classes = 3
    feat_dims = [128, 256]

    key = jax.random.PRNGKey(0)
    kx, kp = jax.random.split(key)
    x = jax.random.normal(kx, (B, C, H, W), jnp.float32)
    params = init_params(kp, C * H * W, feat_dims, num_classes)
    fused = prepare_fused_params(params, num_classes)

    outs, cat_feats = ensemble_forward(x, fused, num_classes, return_cat=True)
    jax.block_until_ready((outs, cat_feats))

    ref_outs, ref_cat = reference_forward(x, params, num_classes)
    # bf16 MXU operands / bf16 outputs with f32 accumulation vs. a pure-f32
    # reference: tolerance loosened accordingly (values are O(1) here).
    for j in range(num_classes):
        assert jnp.allclose(outs[j], ref_outs[j], atol=5e-2, rtol=5e-2), \
            f"out {j} mismatch"
    assert jnp.allclose(cat_feats.astype(jnp.float32), ref_cat,
                        atol=5e-2, rtol=5e-2), "cat_feats mismatch"

    print("KERNEL_OK")
</pallas_src>

<mosaic_0001>
module attributes {stable_mosaic.version = 11 : i64} {
  func.func @kernel(%arg0: i32, %arg1: i32, %arg2: memref<16x512xbf16, #tpu.memory_space<vmem>>, %arg3: memref<512x512xbf16, #tpu.memory_space<vmem>>, %arg4: memref<1x512xf32, #tpu.memory_space<vmem>>, %arg5: memref<512x128xbf16, #tpu.memory_space<vmem>>, %arg6: memref<1x128xf32, #tpu.memory_space<vmem>>, %arg7: memref<16x128xbf16, #tpu.memory_space<vmem>>, %arg8: memref<16x512xbf16, #tpu.memory_space<vmem>>, %arg9: memref<16x512xf32, #tpu.memory_space<vmem>>) attributes {dimension_semantics = [#tpu.dimension_semantics<parallel>, #tpu.dimension_semantics<arbitrary>], iteration_bounds = array<i64: 1, 2>, scalar_prefetch = 0 : i64, scratch_operands = 1 : i64, tpu.core_type = #tpu.core_type<tc>, window_params = [{transform_indices = @transform_0, window_bounds = array<i64: 16, 512>}, {transform_indices = @transform_1, window_bounds = array<i64: 512, 512>}, {pipeline_mode = #tpu.pipeline_mode<synchronous>, transform_indices = @transform_2, window_bounds = array<i64: 1, 512>}, {pipeline_mode = #tpu.pipeline_mode<synchronous>, transform_indices = @transform_3, window_bounds = array<i64: 512, 128>}, {pipeline_mode = #tpu.pipeline_mode<synchronous>, transform_indices = @transform_4, window_bounds = array<i64: 1, 128>}, {transform_indices = @transform_5, window_bounds = array<i64: 16, 128>}, {transform_indices = @transform_6, window_bounds = array<i64: 16, 512>}]} {
    %c0_i32 = arith.constant 0 : i32
    %0 = arith.cmpi eq, %arg1, %c0_i32 : i32
    %1 = arith.extui %0 : i1 to i32
    %c0_i32_0 = arith.constant 0 : i32
    %2 = arith.cmpi ne, %1, %c0_i32_0 : i32
    scf.if %2 {
      %cst_9 = arith.constant 0.000000e+00 : f32
      %12 = vector.broadcast %cst_9 : f32 to vector<16x512xf32>
      %c0_10 = arith.constant 0 : index
      %c0_11 = arith.constant 0 : index
      %13 = vector.load %arg9[%c0_10, %c0_11] : memref<16x512xf32, #tpu.memory_space<vmem>>, vector<16x512xf32>
      tpu.vector_store %arg9[%c0_10, %c0_11], %12 {strides = array<i32>} : memref<16x512xf32, #tpu.memory_space<vmem>>, vector<16x512xf32>,
    } else {
    }
    %c0 = arith.constant 0 : index
    %c0_1 = arith.constant 0 : index
    %3 = vector.load %arg9[%c0, %c0_1] : memref<16x512xf32, #tpu.memory_space<vmem>>, vector<16x512xf32>
    %c0_2 = arith.constant 0 : index
    %c0_3 = arith.constant 0 : index
    %4 = vector.load %arg2[%c0_2, %c0_3] : memref<16x512xbf16, #tpu.memory_space<vmem>>, vector<16x512xbf16>
    %c0_4 = arith.constant 0 : index
    %c0_5 = arith.constant 0 : index
    %5 = vector.load %arg3[%c0_4, %c0_5] : memref<512x512xbf16, #tpu.memory_space<vmem>>, vector<512x512xbf16>
    %cst = arith.constant dense<0.000000e+00> : vector<16x512xf32>
    %6 = tpu.matmul %4, %5, %cst {dimension_numbers = #tpu.dot_dimension_numbers<[1], [0], [0], [1], [0, 0, 1, 1], [], []>} : vector<16x512xbf16>, vector<512x512xbf16>, vector<16x512xf32> -> vector<16x512xf32>
    %7 = arith.addf %3, %6 : vector<16x512xf32>
    %c0_6 = arith.constant 0 : index
    %c0_7 = arith.constant 0 : index
    %8 = vector.load %arg9[%c0_6, %c0_7] : memref<16x512xf32, #tpu.memory_space<vmem>>, vector<16x512xf32>
    tpu.vector_store %arg9[%c0_6, %c0_7], %7 {strides = array<i32>} : memref<16x512xf32, #tpu.memory_space<vmem>>, vector<16x512xf32>,
    %c1_i32 = arith.constant 1 : i32
    %9 = arith.cmpi eq, %arg1, %c1_i32 : i32
    %10 = arith.extui %9 : i1 to i32
    %c0_i32_8 = arith.constant 0 : i32
    %11 = arith.cmpi ne, %10, %c0_i32_8 : i32
    scf.if %11 {
      %c0_9 = arith.constant 0 : index
      %c0_10 = arith.constant 0 : index
      %12 = vector.load %arg9[%c0_9, %c0_10] : memref<16x512xf32, #tpu.memory_space<vmem>>, vector<16x512xf32>
      %c0_11 = arith.constant 0 : index
      %c0_12 = arith.constant 0 : index
      %13 = vector.load %arg4[%c0_11, %c0_12] : memref<1x512xf32, #tpu.memory_space<vmem>>, vector<1x512xf32>
      %14 = vector.broadcast %13 : vector<1x512xf32> to vector<16x512xf32>
      %15 = arith.addf %12, %14 : vector<16x512xf32>
      %cst_13 = arith.constant 0.000000e+00 : f32
      %16 = vector.broadcast %cst_13 : f32 to vector<16x512xf32>
      %17 = arith.maximumf %15, %16 : vector<16x512xf32>
      %18 = arith.truncf %17 : vector<16x512xf32> to vector<16x512xbf16>
      %c0_14 = arith.constant 0 : index
      %c0_15 = arith.constant 0 : index
      %19 = vector.load %arg8[%c0_14, %c0_15] : memref<16x512xbf16, #tpu.memory_space<vmem>>, vector<16x512xbf16>
      tpu.vector_store %arg8[%c0_14, %c0_15], %18 {strides = array<i32>} : memref<16x512xbf16, #tpu.memory_space<vmem>>, vector<16x512xbf16>,
      %c0_16 = arith.constant 0 : index
      %c0_17 = arith.constant 0 : index
      %20 = vector.load %arg5[%c0_16, %c0_17] : memref<512x128xbf16, #tpu.memory_space<vmem>>, vector<512x128xbf16>
      %cst_18 = arith.constant dense<0.000000e+00> : vector<16x128xf32>
      %21 = tpu.matmul %18, %20, %cst_18 {dimension_numbers = #tpu.dot_dimension_numbers<[1], [0], [0], [1], [0, 0, 1, 1], [], []>} : vector<16x512xbf16>, vector<512x128xbf16>, vector<16x128xf32> -> vector<16x128xf32>
      %c0_19 = arith.constant 0 : index
      %c0_20 = arith.constant 0 : index
      %22 = vector.load %arg6[%c0_19, %c0_20] : memref<1x128xf32, #tpu.memory_space<vmem>>, vector<1x128xf32>
      %23 = vector.broadcast %22 : vector<1x128xf32> to vector<16x128xf32>
      %24 = arith.addf %21, %23 : vector<16x128xf32>
      %25 = arith.truncf %24 : vector<16x128xf32> to vector<16x128xbf16>
      %c0_21 = arith.constant 0 : index
      %c0_22 = arith.constant 0 : index
      %26 = vector.load %arg7[%c0_21, %c0_22] : memref<16x128xbf16, #tpu.memory_space<vmem>>, vector<16x128xbf16>
      tpu.vector_store %arg7[%c0_21, %c0_22], %25 {strides = array<i32>} : memref<16x128xbf16, #tpu.memory_space<vmem>>, vector<16x128xbf16>,
    } else {
    }
    return
  }
  func.func @transform_0(%arg0: i32, %arg1: i32) -> (i32, i32) {
    %c0_i32 = arith.constant 0 : i32
    return %arg0, %arg1 : i32, i32
  }
  func.func @transform_1(%arg0: i32, %arg1: i32) -> (i32, i32) {
    %c0_i32 = arith.constant 0 : i32
    %c0_i32_0 = arith.constant 0 : i32
    return %arg1, %c0_i32 : i32, i32
  }
  func.func @transform_2(%arg0: i32, %arg1: i32) -> (i32, i32) {
    %c0_i32 = arith.constant 0 : i32
    %c0_i32_0 = arith.constant 0 : i32
    %c0_i32_1 = arith.constant 0 : i32
    return %c0_i32, %c0_i32_0 : i32, i32
  }
  func.func @transform_3(%arg0: i32, %arg1: i32) -> (i32, i32) {
    %c0_i32 = arith.constant 0 : i32
    %c0_i32_0 = arith.constant 0 : i32
    %c0_i32_1 = arith.constant 0 : i32
    return %c0_i32, %c0_i32_0 : i32, i32
  }
  func.func @transform_4(%arg0: i32, %arg1: i32) -> (i32, i32) {
    %c0_i32 = arith.constant 0 : i32
    %c0_i32_0 = arith.constant 0 : i32
    %c0_i32_1 = arith.constant 0 : i32
    return %c0_i32, %c0_i32_0 : i32, i32
  }
  func.func @transform_5(%arg0: i32, %arg1: i32) -> (i32, i32) {
    %c0_i32 = arith.constant 0 : i32
    %c0_i32_0 = arith.constant 0 : i32
    return %arg0, %c0_i32 : i32, i32
  }
  func.func @transform_6(%arg0: i32, %arg1: i32) -> (i32, i32) {
    %c0_i32 = arith.constant 0 : i32
    %c0_i32_0 = arith.constant 0 : i32
    return %arg0, %c0_i32 : i32, i32
  }
}

</mosaic_0001>

<bundles_post_ra>
// kernel: tpu_custom_call.1
= control target key start
LH: loop header
LB: loop body
LE: loop exit
PB: predicated region body
PF: predicated region fallthrough
CT: control target
= control target key end

     0   :  { %s3153_s0 = inlined_call_operand.hbm [shape: bf16[16,1024], index: 0, kind: input, shape index: {}]   ;;  %s3154_s1 = inlined_call_operand.hbm [shape: bf16[1024,512], index: 1, kind: input, shape index: {}]   ;;  %s3155_s2 = inlined_call_operand.vmem [shape: f32[1,512], index: 2, kind: input, shape index: {}]   ;;  %s3156_s3 = inlined_call_operand.hbm [shape: bf16[512,128], index: 3, kind: input, shape index: {}]   ;;  %s3157_s4 = inlined_call_operand.vmem [shape: f32[1,128], index: 4, kind: input, shape index: {}]   ;;  %s3158_s5 = inlined_call_operand.hbm [shape: bf16[16,128], index: 5, kind: output, shape index: {0}]   ;;  %s3159_s6 = inlined_call_operand.hbm [shape: bf16[16,512], index: 6, kind: output, shape index: {1}]  }
   0x1   :  { %3165 = sst [smem:[#allocation19_spill]] %s3153_s0 }
   0x2   :  { %3166 = sst [smem:[#allocation20_spill]] %s3156_s3 }
   0x3   :  { %12 = vsyncpa [#allocation4], 0 }
   0x4   :  { %14 = vsyncpa [#allocation4 + $0x1], 0 }
   0x5   :  { %15 = vsyncpa [#allocation7], 0 }
   0x6   :  { %17 = vsyncpa [#allocation7 + $0x1], 0 }
   0x7   :  { %18 = vsyncpa [#allocation5], 0 }
   0x8   :  { %19 = vsyncpa [#allocation11], 0  ;;  %s2759_s21 = smov 0   ;;  %s2761_s22 = smov 0  }
   0x9   :  { %s2763_s23 = smov 0   ;;  %s2765_s24 = smov 0  }
   0xa   :  { %s2767_s25 = smov 0   ;;  %s2769_s26 = smov 0  }
   0xb LB: > { %s2788_s27 = sadd.s32 4294967295, %s2707_s26   ;;  %s46_s28 = sadd.s32 1, %s2695_s23  ;;  %s2707_s26 = sphi %s2769_s26, %s25_s26   ;;  %s2703_s25 = sphi %s2767_s25, %s3187_s25   ;;  %s2699_s24 = sphi %s2765_s24, %s3186_s24   ;;  %s2695_s23 = sphi %s2763_s23, %s3185_s23   ;;  %s2691_s22 = sphi %s2761_s22, %s3184_s22   ;;  %s2687_s21 = sphi %s2759_s21, %s3183_s21  }
   0xc   : > { %p53_p0 = scmp.ne.s32.totalorder %s2695_s23, %s2691_s22  ;;  %p54_p1 = scmp.eq.s32.totalorder %s2707_s26, 0 }
   0xd   : > { %p59_p2 = scmp.ne.s32.totalorder %s2691_s22, %s2687_s21  ;;  %p3160_p3 = scmp.eq.s32.totalorder %s2788_s27, 0 }
   0xe   : > { %p55_p4 = por %p54_p1, %p53_p0  ;;  %p1917_p5 = scmp.ge.s32.totalorder %s2707_s26, 1 }
   0xf   : > { %p2799_p6 = por %p3160_p3, %p59_p2  ;;  %p211_p7 = scmp.lt.s32.totalorder %s2707_s26, 3 }
  0x10   : > { %s2709_s7 = smov [#allocation8]   ;;  %p2204_p10 = scmp.lt.s32.totalorder %s2707_s26, 2 }
  0x11   : > { %s3167_s29 = scalar_select %p2799_p6, 1, 0 }
  0x12   : > { %p2804_p8 = pnand %p1917_p5, %p211_p7  ;;  %s226_s8 = sshll.u32 %s2709_s7, 4  ;;  %s227_s8 = int_to_ptr.vmem [resolvable:$true] %s226_s8 }
  0x13   : > { %p2817_p12 = pnand %p2204_p10, %p55_p4  ;;  %s34_s11 = sadd.s32 1, %s2703_s25 }
  0x14   : > { %s3168_s30 = scalar_select %p2804_p8, 1, 0 }
  0x15   : > { %p2192_p9 = pneg %p2804_p8  ;;  %s3171_s3 = sld [smem:[#allocation20_spill]] }
  0x16   : > { %s3170_s10 = scalar_select %p2817_p12, 1, 0 }
  0x17   : > { %p2813_p11 = pnand %p2192_p9, %p3160_p3 }
  0x19   : > { %p2503_p0 = pneg %p2813_p11 }
  0x1b   : > { %s2501_s14 = scalar_lea.hbm %s3171_s3, 4096 }
  0x1c   : > { %p2502_p13 = scmp.ne.s32.totalorder %s3171_s3, %s2501_s14  ;;  %p2508_p4 = scmp.lt.u32.totalorder %s2501_s14, %s3171_s3 }
  0x1e   : > { %p2504_p1 = pnand %p2503_p0, %p2502_p13 }
  0x20   : > { %p2505_p2 = pneg %p2504_p1 }
  0x22   : > { %p2510_p5 = pnand %p2508_p4, %p2505_p2 }
  0x24   : > { %2513 = shalt.err (!%p2510_p5)
}
  0x25   : > { %s2514_s19 = scalar_lea.vmem %s227_s8, 4096  ;;  %p2522_p3 = scmp.lt.s32.totalorder %s227_s8, %s227_s8 }
  0x26   : > { %p2515_p7 = scmp.ne.s32.totalorder %s227_s8, %s2514_s19  ;;  %p2523_p6 = scmp.lt.s32.totalorder %s2514_s19, %s2514_s19 }
  0x28   : > { %p2517_p9 = pnand %p2515_p7, %p2503_p0  ;;  %p2524_p8 = por %p2523_p6, %p2522_p3 }
  0x2a   : > { %p2518_p10 = pneg %p2517_p9 }
  0x2c   : > { %p2525_p12 = pnand %p2524_p8, %p2518_p10 }
  0x2e   : > { %2528 = shalt.err (!%p2525_p12)
}
  0x2f   : > { %s2710_s20 = smov 64   ;;  %s2711_s21 = smov 4  }
  0x30   : > { %2195 = dma.hbm_to_vmem [thread:$0]  (!%p2813_p11), %s3171_s3, 4096, %s227_s8, [#allocation7], %s2710_s20, %s2710_s20, %s2711_s21  }
  0x31   : > { %p35_p13 = scmp.ge.s32.totalorder %s34_s11, 2  ;;  %s2839_s13 = sand.u32 1, %s2695_s23  }
  0x32   : > { %s2110_s14 = sshll.u32 %s2703_s25, 8  ;;  %s1920_s15 = sshll.u32 %s2839_s13, 5 }
  0x33   : > { %s3189_s11 = smov (%p35_p13, %s34_s11), 0  ;;  %s3173_s0 = sld [smem:[#allocation19_spill]] }
  0x34   : > { %3172 = sst [smem:[#allocation17_spill]] %s3189_s11  ;;  %s42_s16 = ssub.s32 %s2703_s25, %s3189_s11 }
  0x35   : > { %p44_p3 = scmp.eq.s32.totalorder %s42_s16, 0  ;;  %s247_s8 = scalar_lea.vmem [#allocation3], %s1920_s15 }
  0x36   : > { %s257_s19 = sshll.u32 %s247_s8, 4  ;;  %s244_s7 = scalar_lea.sflag [#allocation4], %s2839_s13  ;;  %s2857_s19 = int_to_ptr.vmem [resolvable:$true] %s257_s19 }
  0x37   : > { %s2855_s20 = scalar_select %p44_p3, %s2695_s23, %s46_s28  }
  0x38   : > { %p3175_p8 = scmp.ne.s32.totalorder %s3170_s10, 0 }
  0x39   : > { %s2850_s18 = scalar_lea.hbm %s3173_s0, %s2110_s14  ;;  %3174 = sst [smem:[#allocation18_spill]] %s2855_s20 }
  0x3a   : > { %s2529_s12 = scalar_lea.hbm %s2850_s18, 512  ;;  %p2531_p11 = pneg %p3175_p8 }
  0x3b   : > { %p2530_p6 = scmp.ne.s32.totalorder %s2850_s18, %s2529_s12  ;;  %s2534_s15 = scalar_lea.hbm %s3173_s0, 1024 }
  0x3c   : > { %p2535_p1 = scmp.lt.u32.totalorder %s2850_s18, %s3173_s0  ;;  %p2536_p2 = scmp.lt.u32.totalorder %s2534_s15, %s2529_s12 }
  0x3d   : > { %p2532_p12 = pnand %p2531_p11, %p2530_p6  ;;  %p2538_p5 = scmp.lt.u32.totalorder %s2529_s12, %s2850_s18 }
  0x3e   : > { %p2537_p4 = por %p2536_p2, %p2535_p1 }
  0x3f   : > { %p2533_p0 = pneg %p2532_p12 }
  0x40   : > { %p2539_p7 = por %p2538_p5, %p2537_p4 }
  0x42   : > { %p2540_p9 = pnand %p2539_p7, %p2533_p0 }
  0x44   : > { %2543 = shalt.err (!%p2540_p9)
}
  0x45   : > { %s2544_s28 = scalar_lea.vmem %s2857_s19, 512  ;;  %s2712_s8 = smov [#allocation3]  }
  0x46   : > { %p2545_p10 = scmp.ne.s32.totalorder %s2857_s19, %s2544_s28  ;;  %s2549_s14 = sshll.u32 %s2712_s8, 4  ;;  %s2550_s14 = int_to_ptr.vmem [resolvable:$false] %s2549_s14 }
  0x47   : > { %s2551_s16 = scalar_lea.vmem %s2550_s14, 1024  ;;  %p2552_p6 = scmp.lt.s32.totalorder %s2857_s19, %s2550_s14 }
  0x48   : > { %p2547_p13 = pnand %p2545_p10, %p2531_p11  ;;  %p2553_p12 = scmp.lt.s32.totalorder %s2551_s16, %s2544_s28 }
  0x4a   : > { %p2548_p3 = pneg %p2547_p13  ;;  %p2554_p1 = por %p2553_p12, %p2552_p6 }
  0x4c   : > { %p2555_p2 = pnand %p2554_p1, %p2548_p3 }
  0x4e   : > { %2558 = shalt.err (!%p2555_p2)
}
  0x4f   : > { %s2713_s12 = smov 512   ;;  %s2714_s15 = smov 256  }
  0x50   : > { %s2715_s17 = smov 16   ;;  %s1923_s9 = sshll.u32 %s2839_s13, 10 }
  0x51   : > { %2199 = dma.hbm_to_vmem [thread:$0]  (!%p3175_p8), %s2850_s18, 512, %s2857_s19, %s244_s7, %s2713_s12, %s2714_s15, %s2715_s17  }
  0x52   : > { %s2112_s28 = sshll.u32 %s2703_s25, 14  ;;  %s271_s21 = scalar_lea.vmem [#allocation6], %s1923_s9 }
  0x53   : > { %s2895_s16 = scalar_lea.hbm %s3154_s1, %s2112_s28  ;;  %s279_s0 = sshll.u32 %s271_s21, 4  ;;  %s2897_s0 = int_to_ptr.vmem [resolvable:$true] %s279_s0 }
  0x54   : > { %s3176_s3 = sand.u32 1, %s2707_s26   ;;  %s2559_s20 = scalar_lea.hbm %s2895_s16, 16384 }
  0x55   : > { %s2901_s11 = scalar_lea.sflag [#allocation7], %s3176_s3  ;;  %p2560_p0 = scmp.ne.s32.totalorder %s2895_s16, %s2559_s20 }
  0x56   : > { %s2564_s19 = scalar_lea.hbm %s3154_s1, 32768  ;;  %p2565_p7 = scmp.lt.u32.totalorder %s2895_s16, %s3154_s1 }
  0x57   : > { %p2562_p4 = pnand %p2560_p0, %p2531_p11  ;;  %p2566_p9 = scmp.lt.u32.totalorder %s2564_s19, %s2559_s20 }
  0x58   : > { %p2568_p13 = scmp.lt.u32.totalorder %s2559_s20, %s2895_s16 }
  0x59   : > { %p2563_p5 = pneg %p2562_p4  ;;  %p2567_p10 = por %p2566_p9, %p2565_p7 }
  0x5b   : > { %p2569_p3 = por %p2568_p13, %p2567_p10 }
  0x5d   : > { %p2570_p6 = pnand %p2569_p3, %p2563_p5 }
  0x5f   : > { %2573 = shalt.err (!%p2570_p6)
}
  0x60   : > { %s2574_s3 = scalar_lea.vmem %s2897_s0, 16384  ;;  %s2716_s21 = smov [#allocation6]  }
  0x61   : > { %p2575_p12 = scmp.ne.s32.totalorder %s2897_s0, %s2574_s3  ;;  %s2579_s9 = sshll.u32 %s2716_s21, 4  ;;  %s2580_s9 = int_to_ptr.vmem [resolvable:$false] %s2579_s9 }
  0x62   : > { %s2581_s28 = scalar_lea.vmem %s2580_s9, 32768  ;;  %p2582_p0 = scmp.lt.s32.totalorder %s2897_s0, %s2580_s9 }
  0x63   : > { %p2577_p1 = pnand %p2575_p12, %p2531_p11  ;;  %p2583_p4 = scmp.lt.s32.totalorder %s2581_s28, %s2574_s3 }
  0x65   : > { %p2578_p2 = pneg %p2577_p1  ;;  %p2584_p7 = por %p2583_p4, %p2582_p0 }
  0x67   : > { %p2585_p9 = pnand %p2584_p7, %p2578_p2 }
  0x69   : > { %2588 = shalt.err (!%p2585_p9)
}
  0x6a   : > { %2202 = dma.hbm_to_vmem [thread:$0]  (!%p3175_p8), %s2895_s16, 16384, %s2897_s0, %s2901_s11, %s2714_s15, %s2714_s15, %s2715_s17  }
  0x6b   : > { %p3177_p11 = scmp.ne.s32.totalorder %s3168_s30, 0 }
  0x6c   : > { %s293_s20 = sand.u32 (!%p3177_p11), 1, %s2691_s22   ;;  %p3178_p5 = scmp.ne.s32.totalorder (!%p3177_p11), %s3167_s29, 0 }
  0x6d   : > { %291 = sbr.rel (%p3177_p11) target bundleno = 769 (0x301), region = 40  ;;  %s1928_s8 = sshll.u32 (!%p3177_p11), %s293_s20, 5 }
  0x6e   : > { %s294_s14 = scalar_lea.sflag (!%p3177_p11), [#allocation4], %s293_s20  ;;  %s2933_s13 = scalar_lea.vmem (!%p3177_p11), [#allocation3], %s1928_s8 }
  0x74   : > { %2666 = dma.done.wait (%p3178_p5), %s294_s14, 512  }
  0x75   : > { %2668 = vsyncadd (%p3178_p5), %s294_s14, 4294966784  ;;  %s302_s10 = sand.u32 1, %s2788_s27   ;;  %s1929_s18 = sshll.u32 %s293_s20, 10 }
  0x76   : > { %s303_s0 = scalar_lea.sflag [#allocation7], %s302_s10  ;;  %s2940_s11 = scalar_lea.vmem [#allocation6], %s1929_s18 }
  0x77   : > { %2670 = dma.done.wait (%p3178_p5), %s303_s0, 16384  }
  0x78   : > { %2672 = vsyncadd (%p3178_p5), %s303_s0, 4294950912  ;;  %p3179_p8 = scmp.eq.s32.totalorder %s2788_s27, 0 }
  0x7a   : > { %2674 = dma.done.wait (%p3179_p8), [#allocation7], 4096   ;;  %p3180_p10 = pmov %p3179_p8 }
  0x7b   : > { %p1931_p13 = scmp.ne.s32.totalorder %s2699_s24, 0 }
  0x7c   : > { %2676 = vsyncadd (%p3180_p10), [#allocation7], 4294963200  ;;  %v2717_v0 = vmov (!%p1931_p13), 0.0  }
  0x7d   : > { %348 = sbr.rel (%p1931_p13) target bundleno = 132 (0x84), region = 56  ;;  %349 = vst [vmem:[#allocation2] sm:$0xff] (!%p1931_p13), %v2717_v0  ;;  %350 = vst [vmem:[#allocation2 + $0x8] sm:$0xff] (!%p1931_p13), %v2717_v0 }
  0x7e   : > { %351 = vst [vmem:[#allocation2 + $0x10] sm:$0xff] (!%p1931_p13), %v2717_v0  ;;  %352 = vst [vmem:[#allocation2 + $0x18] sm:$0xff] (!%p1931_p13), %v2717_v0 }
  0x7f   : > { %353 = vst [vmem:[#allocation2 + $0x20] sm:$0xff] (!%p1931_p13), %v2717_v0  ;;  %354 = vst [vmem:[#allocation2 + $0x28] sm:$0xff] (!%p1931_p13), %v2717_v0 }
  0x80   : > { %355 = vst [vmem:[#allocation2 + $0x30] sm:$0xff] (!%p1931_p13), %v2717_v0  ;;  %356 = vst [vmem:[#allocation2 + $0x38] sm:$0xff] (!%p1931_p13), %v2717_v0 }
  0x84 PF: > { %v2271_v1 = vld [vmem:[%s2940_s11 + $0x4] ss:$16 sps:$4 sm:$0xff]   ;;  %v2273_v2 = vld [vmem:[%s2940_s11 + $0xc] ss:$16 sps:$4 sm:$0xff]   ;;  %v2275_v3 = vld [vmem:[%s2940_s11] ss:$16 sps:$4 sm:$0xff]  }
  0x85   : > { %1157 = vmatprep.subr.bf16.mxu0 %v2271_v1  ;;  %v2276_v4 = vld [vmem:[%s2940_s11 + $0x8] ss:$16 sps:$4 sm:$0xff]   ;;  %1243 = vmatprep.subr.bf16.mxu1 %v2273_v2  ;;  %v2277_v5 = vld [vmem:[%s2940_s11 + $0x24] ss:$16 sps:$4 sm:$0xff]   ;;  %v2279_v6 = vld [vmem:[%s2940_s11 + $0x2c] ss:$16 sps:$4 sm:$0xff]  }
  0x86   : > { %1158 = vmatpush1.bf16.msra.mxu0 %v2275_v3  ;;  %1244 = vmatpush1.bf16.msra.mxu1 %v2276_v4  ;;  %v2281_v7 = vld [vmem:[%s2940_s11 + $0x20] ss:$16 sps:$4 sm:$0xff]   ;;  %v2282_v8 = vld [vmem:[%s2940_s11 + $0x28] ss:$16 sps:$4 sm:$0xff]   ;;  %v2283_v9 = vld [vmem:[%s2940_s11 + $0x44] ss:$16 sps:$4 sm:$0xff]  }
  0x87   : > { %1159 = vmatprep.subr.bf16.mxu0 %v2277_v5  ;;  %1245 = vmatprep.subr.bf16.mxu1 %v2279_v6  ;;  %v2285_v10 = vld [vmem:[%s2940_s11 + $0x4c] ss:$16 sps:$4 sm:$0xff]   ;;  %v2287_v11 = vld [vmem:[%s2940_s11 + $0x40] ss:$16 sps:$4 sm:$0xff]   ;;  %v2288_v12 = vld [vmem:[%s2940_s11 + $0x48] ss:$16 sps:$4 sm:$0xff]  }
  0x88   : > { %v2289_v13 = vld [vmem:[%s2940_s11 + $0x64] ss:$16 sps:$4 sm:$0xff]   ;;  %v2291_v14 = vld [vmem:[%s2940_s11 + $0x6c] ss:$16 sps:$4 sm:$0xff]   ;;  %v2293_v15 = vld [vmem:[%s2940_s11 + $0x60] ss:$16 sps:$4 sm:$0xff]  }
  0x89   : > { %v2294_v16 = vld [vmem:[%s2940_s11 + $0x68] ss:$16 sps:$4 sm:$0xff]   ;;  %v2295_v17 = vld [vmem:[%s2940_s11 + $0x84] ss:$16 sps:$4 sm:$0xff]   ;;  %v2297_v18 = vld [vmem:[%s2940_s11 + $0x8c] ss:$16 sps:$4 sm:$0xff]  }
  0x8a   : > { %1160 = vmatpush1.bf16.msra.mxu0 %v2281_v7  ;;  %1246 = vmatpush1.bf16.msra.mxu1 %v2282_v8  ;;  %v2299_v19 = vld [vmem:[%s2940_s11 + $0x80] ss:$16 sps:$4 sm:$0xff]   ;;  %v2300_v20 = vld [vmem:[%s2940_s11 + $0x88] ss:$16 sps:$4 sm:$0xff]   ;;  %v2301_v21 = vld [vmem:[%s2940_s11 + $0xa4] ss:$16 sps:$4 sm:$0xff]  }
  0x8b   : > { %1161 = vmatprep.subr.bf16.mxu0 %v2283_v9  ;;  %1247 = vmatprep.subr.bf16.mxu1 %v2285_v10  ;;  %v2303_v22 = vld [vmem:[%s2940_s11 + $0xac] ss:$16 sps:$4 sm:$0xff]   ;;  %v2305_v23 = vld [vmem:[%s2940_s11 + $0xa0] ss:$16 sps:$4 sm:$0xff]   ;;  %v2306_v24 = vld [vmem:[%s2940_s11 + $0xa8] ss:$16 sps:$4 sm:$0xff]  }
  0x8c   : > { %v2307_v25 = vld [vmem:[%s2940_s11 + $0xc4] ss:$16 sps:$4 sm:$0xff]   ;;  %v2309_v26 = vld [vmem:[%s2940_s11 + $0xcc] ss:$16 sps:$4 sm:$0xff]   ;;  %v2311_v27 = vld [vmem:[%s2940_s11 + $0xc0] ss:$16 sps:$4 sm:$0xff]  }
  0x8d   : > { %v2312_v28 = vld [vmem:[%s2940_s11 + $0xc8] ss:$16 sps:$4 sm:$0xff]   ;;  %v2313_v29 = vld [vmem:[%s2940_s11 + $0xe4] ss:$16 sps:$4 sm:$0xff]   ;;  %v2315_v30 = vld [vmem:[%s2940_s11 + $0xec] ss:$16 sps:$4 sm:$0xff]  }
  0x8e   : > { %1162 = vmatpush1.bf16.msra.mxu0 %v2287_v11  ;;  %1248 = vmatpush1.bf16.msra.mxu1 %v2288_v12  ;;  %v2317_v31 = vld [vmem:[%s2940_s11 + $0xe0] ss:$16 sps:$4 sm:$0xff]   ;;  %v2318_v32 = vld [vmem:[%s2940_s11 + $0xe8] ss:$16 sps:$4 sm:$0xff]   ;;  %v2319_v33 = vld [vmem:[%s2940_s11 + $0x104] ss:$16 sps:$4 sm:$0xff]  }
  0x8f   : > { %1163 = vmatprep.subr.bf16.mxu0 %v2289_v13  ;;  %1249 = vmatprep.subr.bf16.mxu1 %v2291_v14  ;;  %v2321_v34 = vld [vmem:[%s2940_s11 + $0x10c] ss:$16 sps:$4 sm:$0xff]   ;;  %v2323_v35 = vld [vmem:[%s2940_s11 + $0x100] ss:$16 sps:$4 sm:$0xff]   ;;  %v2324_v36 = vld [vmem:[%s2940_s11 + $0x108] ss:$16 sps:$4 sm:$0xff]  }
  0x90   : > { %v2325_v37 = vld [vmem:[%s2940_s11 + $0x124] ss:$16 sps:$4 sm:$0xff]   ;;  %v2327_v38 = vld [vmem:[%s2940_s11 + $0x12c] ss:$16 sps:$4 sm:$0xff]   ;;  %v2329_v39 = vld [vmem:[%s2940_s11 + $0x120] ss:$16 sps:$4 sm:$0xff]  }
  0x91   : > { %v2330_v40 = vld [vmem:[%s2940_s11 + $0x128] ss:$16 sps:$4 sm:$0xff]   ;;  %v2331_v41 = vld [vmem:[%s2940_s11 + $0x144] ss:$16 sps:$4 sm:$0xff]   ;;  %v2333_v42 = vld [vmem:[%s2940_s11 + $0x14c] ss:$16 sps:$4 sm:$0xff]  }
  0x92   : > { %1164 = vmatpush1.bf16.msra.mxu0 %v2293_v15  ;;  %1250 = vmatpush1.bf16.msra.mxu1 %v2294_v16  ;;  %v2335_v43 = vld [vmem:[%s2940_s11 + $0x140] ss:$16 sps:$4 sm:$0xff]   ;;  %v2336_v44 = vld [vmem:[%s2940_s11 + $0x148] ss:$16 sps:$4 sm:$0xff]   ;;  %v2337_v45 = vld [vmem:[%s2940_s11 + $0x164] ss:$16 sps:$4 sm:$0xff]  }
  0x93   : > { %1165 = vmatprep.subr.bf16.mxu0 %v2295_v17  ;;  %1251 = vmatprep.subr.bf16.mxu1 %v2297_v18  ;;  %v2339_v46 = vld [vmem:[%s2940_s11 + $0x16c] ss:$16 sps:$4 sm:$0xff]   ;;  %v2341_v47 = vld [vmem:[%s2940_s11 + $0x160] ss:$16 sps:$4 sm:$0xff]   ;;  %v2342_v48 = vld [vmem:[%s2940_s11 + $0x168] ss:$16 sps:$4 sm:$0xff]  }
  0x94   : > { %v2369_v49 = vld [vmem:[%s2933_s13 + $0x4] ss:$16 sps:$4 sm:$0xff]   ;;  %v2345_v51 = vld [vmem:[%s2940_s11 + $0x18c] ss:$16 sps:$4 sm:$0xff]   ;;  %v2347_v52 = vld [vmem:[%s2940_s11 + $0x180] ss:$16 sps:$4 sm:$0xff]  }
  0x95   : > { %v2343_v50 = vld [vmem:[%s2940_s11 + $0x184] ss:$16 sps:$4 sm:$0xff]   ;;  %1189 = vmatprep.mubr.bf16.mxu0 %v2369_v49  ;;  %1275 = vmatprep.mubr.bf16.mxu1 %v2369_v49  ;;  %v2348_v53 = vld [vmem:[%s2940_s11 + $0x188] ss:$16 sps:$4 sm:$0xff]   ;;  %v2351_v55 = vld [vmem:[%s2940_s11 + $0x1ac] ss:$16 sps:$4 sm:$0xff]  }
  0x96   : > { %1166 = vmatpush1.bf16.msra.mxu0 %v2299_v19  ;;  %1252 = vmatpush1.bf16.msra.mxu1 %v2300_v20  ;;  %v2349_v54 = vld [vmem:[%s2940_s11 + $0x1a4] ss:$16 sps:$4 sm:$0xff]   ;;  %v2353_v56 = vld [vmem:[%s2940_s11 + $0x1a0] ss:$16 sps:$4 sm:$0xff]   ;;  %v2354_v57 = vld [vmem:[%s2940_s11 + $0x1a8] ss:$16 sps:$4 sm:$0xff]  }
  0x97   : > { %1167 = vmatprep.subr.bf16.mxu0 %v2301_v21  ;;  %1253 = vmatprep.subr.bf16.mxu1 %v2303_v22  ;;  %v2355_v58 = vld [vmem:[%s2940_s11 + $0x1c4] ss:$16 sps:$4 sm:$0xff]   ;;  %v2357_v59 = vld [vmem:[%s2940_s11 + $0x1cc] ss:$16 sps:$4 sm:$0xff]   ;;  %v2359_v60 = vld [vmem:[%s2940_s11 + $0x1c0] ss:$16 sps:$4 sm:$0xff]  }
  0x98   : > { %v2360_v61 = vld [vmem:[%s2940_s11 + $0x1c8] ss:$16 sps:$4 sm:$0xff]   ;;  %v2361_v62 = vld [vmem:[%s2940_s11 + $0x1e4] ss:$16 sps:$4 sm:$0xff]   ;;  %v2363_v63 = vld [vmem:[%s2940_s11 + $0x1ec] ss:$16 sps:$4 sm:$0xff]  }
  0x99   : > { %v2365_v0 = vld [vmem:[%s2940_s11 + $0x1e0] ss:$16 sps:$4 sm:$0xff]   ;;  %v2366_v1 = vld [vmem:[%s2940_s11 + $0x1e8] ss:$16 sps:$4 sm:$0xff]   ;;  %v2372_v2 = vld [vmem:[%s2940_s11 + $0x204] ss:$16 sps:$4 sm:$0xff]  }
  0x9a   : > { %1168 = vmatpush1.bf16.msra.mxu0 %v2305_v23  ;;  %1254 = vmatpush1.bf16.msra.mxu1 %v2306_v24  ;;  %v2375_v3 = vld [vmem:[%s2940_s11 + $0x20c] ss:$16 sps:$4 sm:$0xff]   ;;  %v2367_v4 = vld [vmem:[%s2933_s13] ss:$16 sps:$4 sm:$0xff]   ;;  %v2373_v6 = vld [vmem:[%s2940_s11 + $0x208] ss:$16 sps:$4 sm:$0xff]  }
  0x9b   : > { %1169 = vmatprep.subr.bf16.mxu0 %v2307_v25  ;;  %1255 = vmatprep.subr.bf16.mxu1 %v2309_v26  ;;  %v2370_v5 = vld [vmem:[%s2940_s11 + $0x200] ss:$16 sps:$4 sm:$0xff]   ;;  %v2378_v7 = vld [vmem:[%s2940_s11 + $0x224] ss:$16 sps:$4 sm:$0xff]   ;;  %v2381_v8 = vld [vmem:[%s2940_s11 + $0x22c] ss:$16 sps:$4 sm:$0xff]  }
  0x9c   : > { %v2376_v9 = vld [vmem:[%s2940_s11 + $0x220] ss:$16 sps:$4 sm:$0xff]   ;;  %v2379_v10 = vld [vmem:[%s2940_s11 + $0x228] ss:$16 sps:$4 sm:$0xff]   ;;  %v2384_v11 = vld [vmem:[%s2940_s11 + $0x244] ss:$16 sps:$4 sm:$0xff]  }
  0x9d   : > { %v2387_v12 = vld [vmem:[%s2940_s11 + $0x24c] ss:$16 sps:$4 sm:$0xff]   ;;  %v2382_v13 = vld [vmem:[%s2940_s11 + $0x240] ss:$16 sps:$4 sm:$0xff]   ;;  %v2385_v14 = vld [vmem:[%s2940_s11 + $0x248] ss:$16 sps:$4 sm:$0xff]  }
  0x9e   : > { %1170 = vmatpush1.bf16.msra.mxu0 %v2311_v27  ;;  %1256 = vmatpush1.bf16.msra.mxu1 %v2312_v28  ;;  %v2390_v15 = vld [vmem:[%s2940_s11 + $0x264] ss:$16 sps:$4 sm:$0xff]   ;;  %v2393_v16 = vld [vmem:[%s2940_s11 + $0x26c] ss:$16 sps:$4 sm:$0xff]   ;;  %v2388_v17 = vld [vmem:[%s2940_s11 + $0x260] ss:$16 sps:$4 sm:$0xff]  }
  0x9f   : > { %1171 = vmatprep.subr.bf16.mxu0 %v2313_v29  ;;  %1257 = vmatprep.subr.bf16.mxu1 %v2315_v30  ;;  %v2391_v18 = vld [vmem:[%s2940_s11 + $0x268] ss:$16 sps:$4 sm:$0xff]   ;;  %v2396_v19 = vld [vmem:[%s2940_s11 + $0x284] ss:$16 sps:$4 sm:$0xff]   ;;  %v2399_v20 = vld [vmem:[%s2940_s11 + $0x28c] ss:$16 sps:$4 sm:$0xff]  }
  0xa0   : > { %v2394_v21 = vld [vmem:[%s2940_s11 + $0x280] ss:$16 sps:$4 sm:$0xff]   ;;  %v2397_v22 = vld [vmem:[%s2940_s11 + $0x288] ss:$16 sps:$4 sm:$0xff]   ;;  %v2402_v23 = vld [vmem:[%s2940_s11 + $0x2a4] ss:$16 sps:$4 sm:$0xff]  }
  0xa1   : > { %v2405_v24 = vld [vmem:[%s2940_s11 + $0x2ac] ss:$16 sps:$4 sm:$0xff]   ;;  %v2400_v25 = vld [vmem:[%s2940_s11 + $0x2a0] ss:$16 sps:$4 sm:$0xff]   ;;  %v2403_v26 = vld [vmem:[%s2940_s11 + $0x2a8] ss:$16 sps:$4 sm:$0xff]  }
  0xa2   : > { %1172 = vmatpush1.bf16.msra.mxu0 %v2317_v31  ;;  %1258 = vmatpush1.bf16.msra.mxu1 %v2318_v32  ;;  %v2408_v27 = vld [vmem:[%s2940_s11 + $0x2c4] ss:$16 sps:$4 sm:$0xff]   ;;  %v2411_v28 = vld [vmem:[%s2940_s11 + $0x2cc] ss:$16 sps:$4 sm:$0xff]   ;;  %v2406_v30 = vld [vmem:[%s2940_s11 + $0x2c0] ss:$16 sps:$4 sm:$0xff]  }
  0xa3   : > { %1173 = vmatprep.subr.bf16.mxu0 %v2319_v33  ;;  %1259 = vmatprep.subr.bf16.mxu1 %v2321_v34  ;;  %v2468_v29 = vld [vmem:[%s2933_s13 + $0xc] ss:$16 sps:$4 sm:$0xff]   ;;  %v2409_v31 = vld [vmem:[%s2940_s11 + $0x2c8] ss:$16 sps:$4 sm:$0xff]   ;;  %v2414_v32 = vld [vmem:[%s2940_s11 + $0x2e4] ss:$16 sps:$4 sm:$0xff]  }
  0xa4   : > { %v2417_v33 = vld [vmem:[%s2940_s11 + $0x2ec] ss:$16 sps:$4 sm:$0xff]   ;;  %v2412_v34 = vld [vmem:[%s2940_s11 + $0x2e0] ss:$16 sps:$4 sm:$0xff]   ;;  %p2064_p3 = scmp.ne.s32.totalorder %s2699_s24, 1 }
  0xa5   : > { %v2441_v49 = vld [vmem:[%s2940_s11 + $0x36c] ss:$16 sps:$4 sm:$0xff]  }
  0xa6   : > { %1174 = vmatpush1.bf16.msra.mxu0 %v2323_v35  ;;  %1260 = vmatpush1.bf16.msra.mxu1 %v2324_v36  ;;  %v2415_v35 = vld [vmem:[%s2940_s11 + $0x2e8] ss:$16 sps:$4 sm:$0xff]   ;;  %v2420_v36 = vld [vmem:[%s2940_s11 + $0x304] ss:$16 sps:$4 sm:$0xff]  }
  0xa7   : > { %1175 = vmatprep.subr.bf16.mxu0 %v2325_v37  ;;  %1261 = vmatprep.subr.bf16.mxu1 %v2327_v38  ;;  %v2423_v37 = vld [vmem:[%s2940_s11 + $0x30c] ss:$16 sps:$4 sm:$0xff]   ;;  %v2418_v38 = vld [vmem:[%s2940_s11 + $0x300] ss:$16 sps:$4 sm:$0xff]  }
  0xaa   : > { %1176 = vmatpush1.bf16.msra.mxu0 %v2329_v39  ;;  %1262 = vmatpush1.bf16.msra.mxu1 %v2330_v40  ;;  %v2421_v39 = vld [vmem:[%s2940_s11 + $0x308] ss:$16 sps:$4 sm:$0xff]   ;;  %v2426_v40 = vld [vmem:[%s2940_s11 + $0x324] ss:$16 sps:$4 sm:$0xff]  }
  0xab   : > { %1177 = vmatprep.subr.bf16.mxu0 %v2331_v41  ;;  %1263 = vmatprep.subr.bf16.mxu1 %v2333_v42  ;;  %v2429_v41 = vld [vmem:[%s2940_s11 + $0x32c] ss:$16 sps:$4 sm:$0xff]   ;;  %v2424_v42 = vld [vmem:[%s2940_s11 + $0x320] ss:$16 sps:$4 sm:$0xff]  }
  0xae   : > { %1178 = vmatpush1.bf16.msra.mxu0 %v2335_v43  ;;  %1264 = vmatpush1.bf16.msra.mxu1 %v2336_v44  ;;  %v2427_v43 = vld [vmem:[%s2940_s11 + $0x328] ss:$16 sps:$4 sm:$0xff]   ;;  %v2432_v44 = vld [vmem:[%s2940_s11 + $0x344] ss:$16 sps:$4 sm:$0xff]  }
  0xaf   : > { %1179 = vmatprep.subr.bf16.mxu0 %v2337_v45  ;;  %1265 = vmatprep.subr.bf16.mxu1 %v2339_v46  ;;  %v2435_v45 = vld [vmem:[%s2940_s11 + $0x34c] ss:$16 sps:$4 sm:$0xff]   ;;  %v2430_v46 = vld [vmem:[%s2940_s11 + $0x340] ss:$16 sps:$4 sm:$0xff]  }
  0xb2   : > { %1180 = vmatpush1.bf16.msra.mxu0 %v2341_v47  ;;  %1266 = vmatpush1.bf16.msra.mxu1 %v2342_v48  ;;  %v2433_v47 = vld [vmem:[%s2940_s11 + $0x348] ss:$16 sps:$4 sm:$0xff]   ;;  %v2438_v48 = vld [vmem:[%s2940_s11 + $0x364] ss:$16 sps:$4 sm:$0xff]  }
  0xb3   : > { %1181 = vmatprep.subr.bf16.mxu0 %v2343_v50  ;;  %1267 = vmatprep.subr.bf16.mxu1 %v2345_v51  ;;  %v2436_v50 = vld [vmem:[%s2940_s11 + $0x360] ss:$16 sps:$4 sm:$0xff]   ;;  %v2439_v51 = vld [vmem:[%s2940_s11 + $0x368] ss:$16 sps:$4 sm:$0xff]  }
  0xb6   : > { %1182 = vmatpush1.bf16.msra.mxu0 %v2347_v52  ;;  %1268 = vmatpush1.bf16.msra.mxu1 %v2348_v53  ;;  %v2444_v52 = vld [vmem:[%s2940_s11 + $0x384] ss:$16 sps:$4 sm:$0xff]   ;;  %v2447_v53 = vld [vmem:[%s2940_s11 + $0x38c] ss:$16 sps:$4 sm:$0xff]  }
  0xb7   : > { %1183 = vmatprep.subr.bf16.mxu0 %v2349_v54  ;;  %1269 = vmatprep.subr.bf16.mxu1 %v2351_v55  ;;  %v2442_v54 = vld [vmem:[%s2940_s11 + $0x380] ss:$16 sps:$4 sm:$0xff]   ;;  %v2445_v55 = vld [vmem:[%s2940_s11 + $0x388] ss:$16 sps:$4 sm:$0xff]  }
  0xba   : > { %1184 = vmatpush1.bf16.msra.mxu0 %v2353_v56  ;;  %1270 = vmatpush1.bf16.msra.mxu1 %v2354_v57  ;;  %v2450_v56 = vld [vmem:[%s2940_s11 + $0x3a4] ss:$16 sps:$4 sm:$0xff]   ;;  %v2453_v57 = vld [vmem:[%s2940_s11 + $0x3ac] ss:$16 sps:$4 sm:$0xff]  }
  0xbb   : > { %1185 = vmatprep.subr.bf16.mxu0 %v2355_v58  ;;  %1271 = vmatprep.subr.bf16.mxu1 %v2357_v59  ;;  %v2448_v58 = vld [vmem:[%s2940_s11 + $0x3a0] ss:$16 sps:$4 sm:$0xff]   ;;  %v2451_v59 = vld [vmem:[%s2940_s11 + $0x3a8] ss:$16 sps:$4 sm:$0xff]  }
  0xbe   : > { %1186 = vmatpush1.bf16.msra.mxu0 %v2359_v60  ;;  %1272 = vmatpush1.bf16.msra.mxu1 %v2360_v61  ;;  %v2456_v60 = vld [vmem:[%s2940_s11 + $0x3c4] ss:$16 sps:$4 sm:$0xff]   ;;  %v2459_v61 = vld [vmem:[%s2940_s11 + $0x3cc] ss:$16 sps:$4 sm:$0xff]  }
  0xbf   : > { %1187 = vmatprep.subr.bf16.mxu0 %v2361_v62  ;;  %1273 = vmatprep.subr.bf16.mxu1 %v2363_v63  ;;  %v2454_v62 = vld [vmem:[%s2940_s11 + $0x3c0] ss:$16 sps:$4 sm:$0xff]   ;;  %v2457_v63 = vld [vmem:[%s2940_s11 + $0x3c8] ss:$16 sps:$4 sm:$0xff]  }
  0xc2   : > { %1188 = vmatpush1.bf16.msra.mxu0 %v2365_v0  ;;  %1274 = vmatpush1.bf16.msra.mxu1 %v2366_v1  ;;  %v2462_v0 = vld [vmem:[%s2940_s11 + $0x3e4] ss:$16 sps:$4 sm:$0xff]   ;;  %v2465_v1 = vld [vmem:[%s2940_s11 + $0x3ec] ss:$16 sps:$4 sm:$0xff]  }
  0xc3   : > { %1200 = vmatprep.subr.bf16.mxu0 %v2372_v2  ;;  %1286 = vmatprep.subr.bf16.mxu1 %v2375_v3  ;;  %v2460_v2 = vld [vmem:[%s2940_s11 + $0x3e0] ss:$16 sps:$4 sm:$0xff]   ;;  %v2463_v3 = vld [vmem:[%s2940_s11 + $0x3e8] ss:$16 sps:$4 sm:$0xff]  }
  0xc5   : > { %1190 = vmatmul.mubr.bf16.vlgmr.msra.gmra.mrb[0].mxu0 %v2367_v4  ;;  %1276 = vmatmul.mubr.bf16.vlgmr.msra.gmra.mrb[0].mxu1 %v2367_v4  ;;  %v2466_v4 = vld [vmem:[%s2933_s13 + $0x8] ss:$16 sps:$4 sm:$0xff]  }
  0xc6   : > { %1201 = vmatpush1.bf16.msra.mxu0 %v2370_v5  ;;  %1287 = vmatpush1.bf16.msra.mxu1 %v2373_v6  ;;  %v357_v5 = vld [vmem:[#allocation2] sm:$0xff]  ;;  %v359_v6 = vld [vmem:[#allocation2 + $0x10] sm:$0xff] }
  0xc7   : > { %1202 = vmatprep.subr.bf16.mxu0 %v2378_v7  ;;  %1288 = vmatprep.subr.bf16.mxu1 %v2381_v8  ;;  %v358_v7 = vld [vmem:[#allocation2 + $0x8] sm:$0xff]  ;;  %v360_v8 = vld [vmem:[#allocation2 + $0x18] sm:$0xff] }
  0xc8   : > { %1232 = vmatprep.mubr.bf16.mxu0 %v2468_v29  ;;  %1318 = vmatprep.mubr.bf16.mxu1 %v2468_v29  ;;  %v2469_v29 = vld [vmem:[#allocation8 + $0x40] sm:$0xff] (!%p2064_p3)  }
  0xca   : > { %1203 = vmatpush1.bf16.msra.mxu0 %v2376_v9  ;;  %1289 = vmatpush1.bf16.msra.mxu1 %v2379_v10 }
  0xcb   : > { %1204 = vmatprep.subr.bf16.mxu0 %v2384_v11  ;;  %1290 = vmatprep.subr.bf16.mxu1 %v2387_v12  ;;  %v361_v11 = vld [vmem:[#allocation2 + $0x20] sm:$0xff]  ;;  %v363_v12 = vld [vmem:[#allocation2 + $0x30] sm:$0xff] }
  0xce   : > { %1205 = vmatpush1.bf16.msra.mxu0 %v2382_v13  ;;  %1291 = vmatpush1.bf16.msra.mxu1 %v2385_v14 }
  0xcf   : > { %1206 = vmatprep.subr.bf16.mxu0 %v2390_v15  ;;  %1292 = vmatprep.subr.bf16.mxu1 %v2393_v16 }
  0xd2   : > { %1207 = vmatpush1.bf16.msra.mxu0 %v2388_v17  ;;  %1293 = vmatpush1.bf16.msra.mxu1 %v2391_v18  ;;  %v362_v17 = vld [vmem:[#allocation2 + $0x28] sm:$0xff]  ;;  %v364_v18 = vld [vmem:[#allocation2 + $0x38] sm:$0xff] }
  0xd3   : > { %1208 = vmatprep.subr.bf16.mxu0 %v2396_v19  ;;  %1294 = vmatprep.subr.bf16.mxu1 %v2399_v20 }
  0xd6   : > { %1209 = vmatpush1.bf16.msra.mxu0 %v2394_v21  ;;  %1295 = vmatpush1.bf16.msra.mxu1 %v2397_v22 }
  0xd7   : > { %1210 = vmatprep.subr.bf16.mxu0 %v2402_v23  ;;  %1296 = vmatprep.subr.bf16.mxu1 %v2405_v24 }
  0xda   : > { %1211 = vmatpush1.bf16.msra.mxu0 %v2400_v25  ;;  %1297 = vmatpush1.bf16.msra.mxu1 %v2403_v26 }
  0xdb   : > { %1212 = vmatprep.subr.bf16.mxu0 %v2408_v27  ;;  %1298 = vmatprep.subr.bf16.mxu1 %v2411_v28 }
  0xde   : > { %1213 = vmatpush1.bf16.msra.mxu0 %v2406_v30  ;;  %1299 = vmatpush1.bf16.msra.mxu1 %v2409_v31  ;;  %v2470_v30 = vld [vmem:[#allocation8 + $0xc0] sm:$0xff] (!%p2064_p3)  }
  0xdf   : > { %1214 = vmatprep.subr.bf16.mxu0 %v2414_v32  ;;  %1300 = vmatprep.subr.bf16.mxu1 %v2417_v33  ;;  %v2471_v31 = vld [vmem:[#allocation8] sm:$0xff] (!%p2064_p3)   ;;  %v2473_v33 = vld [vmem:[#allocation8 + $0x48] sm:$0xff] (!%p2064_p3)  }
  0xe0   : > { %v2472_v32 = vld [vmem:[#allocation8 + $0x80] sm:$0xff] (!%p2064_p3)  }
  0xe2   : > { %1215 = vmatpush1.bf16.msra.mxu0 %v2412_v34  ;;  %1301 = vmatpush1.bf16.msra.mxu1 %v2415_v35  ;;  %v2474_v34 = vld [vmem:[#allocation8 + $0xc8] sm:$0xff] (!%p2064_p3)  }
  0xe3   : > { %1216 = vmatprep.subr.bf16.mxu0 %v2420_v36  ;;  %1302 = vmatprep.subr.bf16.mxu1 %v2423_v37  ;;  %v2475_v35 = vld [vmem:[#allocation8 + $0x8] sm:$0xff] (!%p2064_p3)   ;;  %v2477_v37 = vld [vmem:[#allocation8 + $0x50] sm:$0xff] (!%p2064_p3)  }
  0xe4   : > { %v2476_v36 = vld [vmem:[#allocation8 + $0x88] sm:$0xff] (!%p2064_p3)  }
  0xe6   : > { %1217 = vmatpush1.bf16.msra.mxu0 %v2418_v38  ;;  %1303 = vmatpush1.bf16.msra.mxu1 %v2421_v39  ;;  %v2478_v38 = vld [vmem:[#allocation8 + $0xd0] sm:$0xff] (!%p2064_p3)  }
  0xe7   : > { %1218 = vmatprep.subr.bf16.mxu0 %v2426_v40  ;;  %1304 = vmatprep.subr.bf16.mxu1 %v2429_v41  ;;  %v2479_v39 = vld [vmem:[#allocation8 + $0x10] sm:$0xff] (!%p2064_p3)   ;;  %v2481_v41 = vld [vmem:[#allocation8 + $0x58] sm:$0xff] (!%p2064_p3)  }
  0xe8   : > { %v2480_v40 = vld [vmem:[#allocation8 + $0x90] sm:$0xff] (!%p2064_p3)  }
  0xea   : > { %1219 = vmatpush1.bf16.msra.mxu0 %v2424_v42  ;;  %1305 = vmatpush1.bf16.msra.mxu1 %v2427_v43  ;;  %v2482_v42 = vld [vmem:[#allocation8 + $0xd8] sm:$0xff] (!%p2064_p3)  }
  0xeb   : > { %1220 = vmatprep.subr.bf16.mxu0 %v2432_v44  ;;  %1306 = vmatprep.subr.bf16.mxu1 %v2435_v45  ;;  %v2483_v43 = vld [vmem:[#allocation8 + $0x18] sm:$0xff] (!%p2064_p3)   ;;  %v2485_v45 = vld [vmem:[#allocation8 + $0x60] sm:$0xff] (!%p2064_p3)  }
  0xec   : > { %v2484_v44 = vld [vmem:[#allocation8 + $0x98] sm:$0xff] (!%p2064_p3)  }
  0xee   : > { %1221 = vmatpush1.bf16.msra.mxu0 %v2430_v46  ;;  %1307 = vmatpush1.bf16.msra.mxu1 %v2433_v47  ;;  %v2486_v46 = vld [vmem:[#allocation8 + $0xe0] sm:$0xff] (!%p2064_p3)  }
  0xef   : > { %1222 = vmatprep.subr.bf16.mxu0 %v2438_v48  ;;  %1308 = vmatprep.subr.bf16.mxu1 %v2441_v49  ;;  %v2487_v47 = vld [vmem:[#allocation8 + $0x20] sm:$0xff] (!%p2064_p3)   ;;  %v1359_v49 = vlaneseq (!%p2064_p3) }
  0xf0   : > { %v2488_v48 = vld [vmem:[#allocation8 + $0xa0] sm:$0xff] (!%p2064_p3)  }
  0xf2   : > { %1223 = vmatpush1.bf16.msra.mxu0 %v2436_v50  ;;  %1309 = vmatpush1.bf16.msra.mxu1 %v2439_v51  ;;  %v2489_v50 = vld [vmem:[#allocation8 + $0x68] sm:$0xff] (!%p2064_p3)  }
  0xf3   : > { %1224 = vmatprep.subr.bf16.mxu0 %v2444_v52  ;;  %1310 = vmatprep.subr.bf16.mxu1 %v2447_v53  ;;  %v2490_v51 = vld [vmem:[#allocation8 + $0xe8] sm:$0xff] (!%p2064_p3)  }
  0xf4   : > { %v2491_v52 = vld [vmem:[#allocation8 + $0x28] sm:$0xff] (!%p2064_p3)  }
  0xf5   : > { %v2492_v53 = vld [vmem:[#allocation8 + $0xa8] sm:$0xff] (!%p2064_p3)  }
  0xf6   : > { %1225 = vmatpush1.bf16.msra.mxu0 %v2442_v54  ;;  %1311 = vmatpush1.bf16.msra.mxu1 %v2445_v55  ;;  %v1360_v54 = vshrl.u32 (!%p2064_p3), %v1359_v49, 7  ;;  %v2493_v55 = vld [vmem:[#allocation8 + $0x70] sm:$0xff] (!%p2064_p3)  }
  0xf7   : > { %1226 = vmatprep.subr.bf16.mxu0 %v2450_v56  ;;  %1312 = vmatprep.subr.bf16.mxu1 %v2453_v57  ;;  %v2494_v56 = vld [vmem:[#allocation8 + $0xf0] sm:$0xff] (!%p2064_p3)  }
  0xf8   : > { %v2495_v57 = vld [vmem:[#allocation8 + $0x30] sm:$0xff] (!%p2064_p3)  }
  0xfa   : > { %1227 = vmatpush1.bf16.msra.mxu0 %v2448_v58  ;;  %1313 = vmatpush1.bf16.msra.mxu1 %v2451_v59  ;;  %v2496_v58 = vld [vmem:[#allocation8 + $0xb0] sm:$0xff] (!%p2064_p3)   ;;  %v1361_v59 = vsub.s32 (!%p2064_p3), 0, %v1360_v54 }
  0xfb   : > { %1228 = vmatprep.subr.bf16.mxu0 %v2456_v60  ;;  %1314 = vmatprep.subr.bf16.mxu1 %v2459_v61  ;;  %v2497_v60 = vld [vmem:[#allocation8 + $0x78] sm:$0xff] (!%p2064_p3)   ;;  %v1365_v61 = vsub.s32 (!%p2064_p3), 1, %v1360_v54 }
  0xfe   : > { %1229 = vmatpush1.bf16.msra.mxu0 %v2454_v62  ;;  %1315 = vmatpush1.bf16.msra.mxu1 %v2457_v63  ;;  %v2498_v62 = vld [vmem:[#allocation8 + $0xf8] sm:$0xff] (!%p2064_p3)   ;;  %v1369_v63 = vsub.s32 (!%p2064_p3), 2, %v1360_v54 }
  0xff   : > { %1230 = vmatprep.subr.bf16.mxu0 %v2462_v0  ;;  %1316 = vmatprep.subr.bf16.mxu1 %v2465_v1  ;;  %v2499_v0 = vld [vmem:[#allocation8 + $0x38] sm:$0xff] (!%p2064_p3)   ;;  %v1373_v1 = vsub.s32 (!%p2064_p3), 3, %v1360_v54 }
 0x102   : > { %1231 = vmatpush1.bf16.msra.mxu0 %v2460_v2  ;;  %1317 = vmatpush1.bf16.msra.mxu1 %v2463_v3  ;;  %v2500_v2 = vld [vmem:[#allocation8 + $0xb8] sm:$0xff] (!%p2064_p3)  }
 0x103   : > { %2124 = vmatprep.subr.bf16.mxu0 (!%p2064_p3), %v2469_v29  ;;  %2146 = vmatprep.subr.bf16.mxu1 (!%p2064_p3), %v2470_v30 }
 0x105   : > { %1233 = vmatmul.mubr.bf16.vlgmr.msra.gmra.mrb[0].mxu0 %v2466_v4  ;;  %1319 = vmatmul.mubr.bf16.vlgmr.msra.gmra.mrb[0].mxu1 %v2466_v4 }
 0x106   : > { %2125 = vmatpush3.bf16.msra.mxu0 (!%p2064_p3), %v2471_v31  ;;  %2147 = vmatpush3.bf16.msra.mxu1 (!%p2064_p3), %v2472_v32 }
 0x107   : > { %2126 = vmatprep.subr.bf16.mxu0 (!%p2064_p3), %v2473_v33  ;;  %2148 = vmatprep.subr.bf16.mxu1 (!%p2064_p3), %v2474_v34 }
 0x10a   : > { %2127 = vmatpush3.bf16.msra.mxu0 (!%p2064_p3), %v2475_v35  ;;  %2149 = vmatpush3.bf16.msra.mxu1 (!%p2064_p3), %v2476_v36 }
 0x10b   : > { %2128 = vmatprep.subr.bf16.mxu0 (!%p2064_p3), %v2477_v37  ;;  %2150 = vmatprep.subr.bf16.mxu1 (!%p2064_p3), %v2478_v38 }
 0x10e   : > { %2129 = vmatpush3.bf16.msra.mxu0 (!%p2064_p3), %v2479_v39  ;;  %2151 = vmatpush3.bf16.msra.mxu1 (!%p2064_p3), %v2480_v40 }
 0x10f   : > { %2130 = vmatprep.subr.bf16.mxu0 (!%p2064_p3), %v2481_v41  ;;  %2152 = vmatprep.subr.bf16.mxu1 (!%p2064_p3), %v2482_v42  ;;  %v2069_v42 = vld [vmem:[%s3157_s4] ss:$0 sm:$0xff] (!%p2064_p3) }
 0x112   : > { %2131 = vmatpush3.bf16.msra.mxu0 (!%p2064_p3), %v2483_v43  ;;  %2153 = vmatpush3.bf16.msra.mxu1 (!%p2064_p3), %v2484_v44 }
 0x113   : > { %2132 = vmatprep.subr.bf16.mxu0 (!%p2064_p3), %v2485_v45  ;;  %2154 = vmatprep.subr.bf16.mxu1 (!%p2064_p3), %v2486_v46 }
 0x116   : > { %2133 = vmatpush3.bf16.msra.mxu0 (!%p2064_p3), %v2487_v47  ;;  %2155 = vmatpush3.bf16.msra.mxu1 (!%p2064_p3), %v2488_v48 }
 0x117   : > { %2134 = vmatprep.subr.bf16.mxu0 (!%p2064_p3), %v2489_v50  ;;  %2156 = vmatprep.subr.bf16.mxu1 (!%p2064_p3), %v2490_v51 }
 0x11a   : > { %2135 = vmatpush3.bf16.msra.mxu0 (!%p2064_p3), %v2491_v52  ;;  %2157 = vmatpush3.bf16.msra.mxu1 (!%p2064_p3), %v2492_v53 }
 0x11b   : > { %2136 = vmatprep.subr.bf16.mxu0 (!%p2064_p3), %v2493_v55  ;;  %2158 = vmatprep.subr.bf16.mxu1 (!%p2064_p3), %v2494_v56 }
 0x11e   : > { %2137 = vmatpush3.bf16.msra.mxu0 (!%p2064_p3), %v2495_v57  ;;  %2159 = vmatpush3.bf16.msra.mxu1 (!%p2064_p3), %v2496_v58 }
 0x11f   : > { %2138 = vmatprep.subr.bf16.mxu0 (!%p2064_p3), %v2497_v60  ;;  %2160 = vmatprep.subr.bf16.mxu1 (!%p2064_p3), %v2498_v62 }
 0x122   : > { %2139 = vmatpush3.bf16.msra.mxu0 (!%p2064_p3), %v2499_v0  ;;  %2161 = vmatpush3.bf16.msra.mxu1 (!%p2064_p3), %v2500_v2 }
 0x1d8   : > { %v1234_v9 = vpop.f32.mrb[0].mxu0  ;;  %v1320_v10 = vpop.f32.mrb[0].mxu1  ;;  %1348 = sbr.rel (%p2064_p3) target bundleno = 717 (0x2cd), region = 60 }
 0x1d9   : > { %v1329_v13 = vadd.f32 %v1234_v9, %v357_v5  ;;  %v1331_v14 = vadd.f32 %v1320_v10, %v359_v6  ;;  %v1236_v15 = vpop.f32.mrb[1].mxu0  ;;  %v1322_v16 = vpop.f32.mrb[1].mxu1 }
 0x1da   : > { %v1330_v19 = vadd.f32 %v1236_v15, %v358_v7  ;;  %v1332_v20 = vadd.f32 %v1322_v16, %v360_v8  ;;  %v1238_v21 = vpop.f32.mrb[2].mxu0  ;;  %v1324_v22 = vpop.f32.mrb[2].mxu1  ;;  %v1357_v7 = vld [vmem:[%s3155_s2] sm:$0xf] (!%p2064_p3) }
 0x1db   : > { %1337 = vst [vmem:[#allocation2] sm:$0xff] %v1329_v13  ;;  %1339 = vst [vmem:[#allocation2 + $0x10] sm:$0xff] %v1331_v14  ;;  %v1333_v23 = vadd.f32 %v1238_v21, %v361_v11  ;;  %v1335_v24 = vadd.f32 %v1324_v22, %v363_v12  ;;  %v1240_v25 = vpop.f32.mrb[3].mxu0  ;;  %v1326_v26 = vpop.f32.mrb[3].mxu1  ;;  %v1362_v9 = vrot.slane (!%p2064_p3), %v1357_v7, %v1361_v59 }
 0x1dc   : > { %1338 = vst [vmem:[#allocation2 + $0x8] sm:$0xff] %v1330_v19  ;;  %1340 = vst [vmem:[#allocation2 + $0x18] sm:$0xff] %v1332_v20  ;;  %v1334_v27 = vadd.f32 %v1240_v25, %v362_v17  ;;  %v1336_v28 = vadd.f32 %v1326_v26, %v364_v18  ;;  %v1366_v10 = vrot.slane (!%p2064_p3), %v1357_v7, %v1365_v61 }
 0x1dd   : > { %1341 = vst [vmem:[#allocation2 + $0x20] sm:$0xff] %v1333_v23  ;;  %1343 = vst [vmem:[#allocation2 + $0x30] sm:$0xff] %v1335_v24  ;;  %v1370_v14 = vrot.slane (!%p2064_p3), %v1357_v7, %v1369_v63  ;;  %v1374_v15 = vrot.slane (!%p2064_p3), %v1357_v7, %v1373_v1 }
 0x1de   : > { %1342 = vst [vmem:[#allocation2 + $0x28] sm:$0xff] %v1334_v27  ;;  %1344 = vst [vmem:[#allocation2 + $0x38] sm:$0xff] %v1336_v28 }
 0x1e2   : > { %v1349_v3 = vld [vmem:[#allocation2] sm:$0xff]  ;;  %v1351_v8 = vld [vmem:[#allocation2 + $0x10] sm:$0xff] }
 0x1e3   : > { %v1350_v4 = vld [vmem:[#allocation2 + $0x8] sm:$0xff]  ;;  %v1352_v11 = vld [vmem:[#allocation2 + $0x18] sm:$0xff]  ;;  %v1379_v16 = vadd.f32 %v1362_v9, %v1349_v3  ;;  %v1381_v20 = vadd.f32 %v1370_v14, %v1351_v8 }
 0x1e4   : > { %v1353_v5 = vld [vmem:[#allocation2 + $0x20] sm:$0xff]  ;;  %v1355_v12 = vld [vmem:[#allocation2 + $0x30] sm:$0xff]  ;;  %v1380_v17 = vadd.f32 %v1366_v10, %v1350_v4  ;;  %v1382_v21 = vadd.f32 %v1374_v15, %v1352_v11 }
 0x1e5   : > { %v1354_v6 = vld [vmem:[#allocation2 + $0x28] sm:$0xff]  ;;  %v1356_v13 = vld [vmem:[#allocation2 + $0x38] sm:$0xff]  ;;  %v1383_v18 = vadd.f32 %v1362_v9, %v1353_v5  ;;  %v1385_v22 = vadd.f32 %v1370_v14, %v1355_v12  ;;  %v1387_v24 = vmax.f32 %v1379_v16, 0.0  ;;  %v1389_v28 = vmax.f32 %v1381_v20, 0.0 }
 0x1e6   : > { %v1384_v19 = vadd.f32 %v1366_v10, %v1354_v6  ;;  %v1386_v23 = vadd.f32 %v1374_v15, %v1356_v13  ;;  %v1388_v25 = vmax.f32 %v1380_v17, 0.0  ;;  %v1390_v29 = vmax.f32 %v1382_v21, 0.0 }
 0x1e7   : > { %v1391_v26 = vmax.f32 %v1383_v18, 0.0  ;;  %v1393_v30 = vmax.f32 %v1385_v22, 0.0 }
 0x1e8   : > { %v1392_v27 = vmax.f32 %v1384_v19, 0.0  ;;  %v1394_v31 = vmax.f32 %v1386_v23, 0.0  ;;  %v2113_v33 = vpack.c.bf16 %v1388_v25, %v1387_v24  ;;  %v2114_v37 = vpack.c.bf16 %v1390_v29, %v1389_v28 }
 0x1e9   : > { %v1395_v35 = vpack.c.bf16 %v1391_v26, %v1387_v24  ;;  %v1397_v39 = vpack.c.bf16 %v1393_v30, %v1389_v28 }
 0x1ea   : > { %v1396_v32 = vpack.c.bf16 %v1392_v27, %v1388_v25  ;;  %v2115_v34 = vpack.c.bf16 %v1392_v27, %v1391_v26  ;;  %v1398_v36 = vpack.c.bf16 %v1394_v31, %v1390_v29  ;;  %v2116_v38 = vpack.c.bf16 %v1394_v31, %v1393_v30  ;;  %1419 = vst [vmem:[#allocation10] sm:$0xff] %v2113_v33 }
 0x1eb   : > { %1420 = vst [vmem:[#allocation10 + $0x8] sm:$0xff] %v2114_v37 }
 0x1ec   : > { %1421 = vst [vmem:[#allocation10 + $0x10] sm:$0xff] %v2115_v34  ;;  %1718 = vmatprep.mubr.bf16.mxu0 %v1396_v32  ;;  %1422 = vst [vmem:[#allocation10 + $0x18] sm:$0xff] %v2116_v38  ;;  %1759 = vmatprep.mubr.bf16.mxu1 %v1398_v36 }
 0x1ed   : > { %1719 = vmatmul.mubr.bf16.vlgmr.msra.gmra.mrb[0].mxu0 %v1395_v35  ;;  %1760 = vmatmul.mubr.bf16.vlgmr.msra.gmra.mrb[0].mxu1 %v1397_v39 }
 0x2c0   : > { %v2140_v40 = vpop.f32.mrb[0].mxu0  ;;  %v2162_v41 = vpop.f32.mrb[0].mxu1 }
 0x2c1   : > { %v2141_v43 = vpop.f32.mrb[1].mxu0  ;;  %v2163_v45 = vpop.f32.mrb[1].mxu1 }
 0x2c2   : > { %v2142_v44 = vadd.f32 %v2141_v43, %v2140_v40  ;;  %v2143_v46 = vpop.f32.mrb[2].mxu0  ;;  %v2164_v47 = vadd.f32 %v2163_v45, %v2162_v41  ;;  %v2165_v48 = vpop.f32.mrb[2].mxu1 }
 0x2c3   : > { %v2144_v49 = vpop.f32.mrb[3].mxu0  ;;  %v2166_v52 = vpop.f32.mrb[3].mxu1 }
 0x2c4   : > { %v1721_v50 = vadd.f32 %v2142_v44, %v2069_v42  ;;  %v2145_v51 = vadd.f32 %v2144_v49, %v2143_v46  ;;  %v2167_v53 = vadd.f32 %v2166_v52, %v2165_v48 }
 0x2c6   : > { %v1762_v54 = vadd.f32 %v2164_v47, %v1721_v50  ;;  %v1724_v55 = vadd.f32 %v2145_v51, %v2069_v42 }
 0x2c8   : > { %v1765_v56 = vadd.f32 %v2167_v53, %v1724_v55 }
 0x2ca   : > { %v2122_v57 = vpack.c.bf16 %v1765_v56, %v1762_v54 }
 0x2cc   : > { %2123 = vst [vmem:[#allocation9] sm:$0xff] %v2122_v57  }
 0x2cd PF: > { %p2206_p6 = scmp.eq.s32.totalorder %s2788_s27, 1  ;;  %s2718_s17 = smov [#allocation9]  }
 0x2ce   : > { %s1787_s16 = sshll.u32 %s2718_s17, 4  ;;  %s1788_s16 = int_to_ptr.vmem [resolvable:$true] %s1787_s16 }
 0x2cf   : > { %s2589_s19 = scalar_lea.vmem %s1788_s16, 128  ;;  %p2596_p0 = scmp.lt.s32.totalorder %s1788_s16, %s1788_s16 }
 0x2d0   : > { %p2590_p12 = scmp.ne.s32.totalorder %s1788_s16, %s2589_s19  ;;  %p2597_p4 = scmp.lt.s32.totalorder %s2589_s19, %s2589_s19 }
 0x2d2   : > { %p2591_p1 = pnand %p2590_p12, %p2206_p6  ;;  %p2598_p7 = por %p2597_p4, %p2596_p0 }
 0x2d4   : > { %p2592_p2 = pneg %p2591_p1 }
 0x2d6   : > { %p2599_p9 = pnand %p2598_p7, %p2592_p2 }
 0x2d8   : > { %2602 = shalt.err (!%p2599_p9)
}
 0x2d9   : > { %s2603_s3 = scalar_lea.hbm %s3158_s5, 128 }
 0x2da   : > { %p2604_p11 = scmp.ne.s32.totalorder %s3158_s5, %s2603_s3  ;;  %p2609_p10 = scmp.lt.u32.totalorder %s2603_s3, %s3158_s5 }
 0x2dc   : > { %p2605_p5 = pnand %p2604_p11, %p2206_p6 }
 0x2de   : > { %p2606_p8 = pneg %p2605_p5 }
 0x2e0   : > { %p2611_p13 = pnand %p2609_p10, %p2606_p8 }
 0x2e2   : > { %2614 = shalt.err (!%p2611_p13)
}
 0x2e3   : > { %s2719_s8 = smov 64   ;;  %s2720_s14 = smov 4  }
 0x2e4   : > { %2185 = dma.vmem_to_hbm [thread:$0]  (%p2206_p6), %s1788_s16, 128, %s3158_s5, [#allocation5], %s2719_s8, %s2719_s8, %s2720_s14  }
 0x2e5   : > { %s2721_s18 = smov [#allocation10]  }
 0x2e6   : > { %s1804_s0 = sshll.u32 %s2721_s18, 4  ;;  %s1805_s0 = int_to_ptr.vmem [resolvable:$true] %s1804_s0 }
 0x2e7   : > { %s2615_s11 = scalar_lea.vmem %s1805_s0, 512  ;;  %p2622_p2 = scmp.lt.s32.totalorder %s1805_s0, %s1805_s0 }
 0x2e8   : > { %p2616_p3 = scmp.ne.s32.totalorder %s1805_s0, %s2615_s11  ;;  %p2623_p0 = scmp.lt.s32.totalorder %s2615_s11, %s2615_s11 }
 0x2ea   : > { %p2617_p12 = pnand %p2616_p3, %p2206_p6  ;;  %p2624_p4 = por %p2623_p0, %p2622_p2 }
 0x2ec   : > { %p2618_p1 = pneg %p2617_p12 }
 0x2ee   : > { %p2625_p7 = pnand %p2624_p4, %p2618_p1 }
 0x2f0   : > { %2628 = shalt.err (!%p2625_p7)
}
 0x2f1   : > { %s2629_s30 = scalar_lea.hbm %s3159_s6, 512 }
 0x2f2   : > { %p2630_p9 = scmp.ne.s32.totalorder %s3159_s6, %s2629_s30  ;;  %p2635_p8 = scmp.lt.u32.totalorder %s2629_s30, %s3159_s6 }
 0x2f4   : > { %p2631_p11 = pnand %p2630_p9, %p2206_p6 }
 0x2f6   : > { %p2632_p5 = pneg %p2631_p11 }
 0x2f8   : > { %p2637_p10 = pnand %p2635_p8, %p2632_p5 }
 0x2fa   : > { %2640 = shalt.err (!%p2637_p10)
}
 0x2fb   : > { %s2722_s7 = smov 256   ;;  %s2723_s12 = smov 16  }
 0x2fc   : > { %2187 = dma.vmem_to_hbm [thread:$0]  (%p2206_p6), %s1805_s0, 512, %s3159_s6, [#allocation11], %s2722_s7, %s2722_s7, %s2723_s12  }
 0x2fd   : > { %2678 = dma.done.wait (%p2206_p6), [#allocation5], 128  }
 0x2fe   : > { %2680 = vsyncadd (%p2206_p6), [#allocation5], 4294967168 }
 0x2ff   : > { %2682 = dma.done.wait (%p2206_p6), [#allocation11], 512  }
 0x300   : > { %2684 = vsyncadd (%p2206_p6), [#allocation11], 4294966784 }
 0x301 PF: > { %s25_s26 = sadd.s32 1, %s2707_s26   ;;  %s3181_s9 = sld [smem:[#allocation18_spill]] }
 0x302   : > { %p22_p13 = scmp.ge.s32.totalorder %s25_s26, 4   ;;  %s3182_s28 = sld [smem:[#allocation17_spill]] }
 0x303   : > { %s3183_s21 = smov %s2691_s22  ;;  %s3184_s22 = smov %s2695_s23 }
 0x304   : > { %s3186_s24 = smov %s2703_s25  ;;  %24 = sbr.rel (!%p22_p13) target bundleno = 11 (0xb), region = 112 }
 0x307   : > { %s3185_s23 = smov %s3181_s9 }
 0x308   : > { %s3187_s25 = smov %s3182_s28 }
 0x30b   :  { %1824 = vsyncpa [#allocation4], 1 }
 0x30c   :  { %1826 = vsyncpa [#allocation4 + $0x1], 1 }
 0x30d   :  { %1827 = vsyncpa [#allocation7], 1 }
 0x30e   :  { %1829 = vsyncpa [#allocation7 + $0x1], 1 }
 0x30f   :  { %1830 = vsyncpa [#allocation5], 1 }
 0x310   :  { %1832 = vsyncpa [#allocation5 + $0x1], 1 }
 0x311   :  { %1833 = vsyncpa [#allocation11], 1 }

</bundles_post_ra>
